<compile_context>
chip_gen: v6e
topology: v6e:2x2x1
jax: 0.10.0
libtpu: 0.0.40
codegen_flags: <defaults>
</compile_context>

<pallas_src>
import functools

import jax
import jax.numpy as jnp
from jax import lax
from jax.experimental import pallas as pl
from jax.experimental.pallas import tpu as pltpu


def _attn_pool_kernel(feats_ref, w_ref, o_ref, m_ref, l_ref, acc_ref, *,
                      n_tokens, n_t, mask_tokens, dot_precision):
    """One (Bt, Nt, D) feats tile; online softmax over the token grid axis."""
    n = pl.program_id(1)

    @pl.when(n == 0)
    def _init():
        m_ref[...] = jnp.full(m_ref.shape, -jnp.inf, dtype=m_ref.dtype)
        l_ref[...] = jnp.zeros(l_ref.shape, dtype=l_ref.dtype)
        acc_ref[...] = jnp.zeros(acc_ref.shape, dtype=acc_ref.dtype)

    feats = feats_ref[...]            # (Bt, Nt, D), input dtype (no f32 up-cast)
    w_b = w_ref[...]                  # (Bt, 1,  D), input dtype

    if mask_tokens:
        # Partial last token block: rows past n_tokens hold unspecified VMEM
        # data.  Zero them so the MXU never multiplies Inf/NaN garbage ...
        tok_sub = lax.broadcasted_iota(jnp.int32, (1, feats.shape[1], 1), 1) + n * n_t
        feats = jnp.where(tok_sub < n_tokens, feats, jnp.zeros((), feats.dtype))

    # Score projection on the MXU (flash 'bqd,bkd->bqk' with q == 1).
    # NOTE: the Linear bias is omitted on purpose: softmax(x + b) == softmax(x).
    scores = jnp.einsum("bod,bnd->bon", w_b, feats,
                        preferred_element_type=jnp.float32,
                        precision=dot_precision)                  # (Bt, 1, Nt) f32

    if mask_tokens:
        # ... and push their scores to -inf so they vanish from the softmax.
        tok_lane = lax.broadcasted_iota(jnp.int32, (1, 1, scores.shape[2]), 2) + n * n_t
        scores = jnp.where(tok_lane < n_tokens, scores, -jnp.inf)

    # Online (flash-style) softmax over the token axis.
    m_prev = m_ref[...]                                           # (Bt, 1, 1)
    m_new = jnp.maximum(m_prev, jnp.max(scores, axis=-1, keepdims=True))
    alpha = jnp.exp(m_prev - m_new)                               # (Bt, 1, 1)
    e = jnp.exp(scores - m_new)                                   # (Bt, 1, Nt)

    l_ref[...] = alpha * l_ref[...] + jnp.sum(e, axis=-1, keepdims=True)
    # Weighted token sum on the MXU (flash 'bqk,bkd->bqd' with q == 1).
    acc_ref[...] = alpha * acc_ref[...] + jnp.einsum(
        "bon,bnd->bod", e.astype(feats.dtype), feats,
        preferred_element_type=jnp.float32, precision=dot_precision)
    m_ref[...] = m_new

    @pl.when(n == pl.num_programs(1) - 1)
    def _finalize():
        # Exact divide: runs once per batch block, approx reciprocal buys nothing.
        o_ref[...] = (acc_ref[...] / l_ref[...]).astype(o_ref.dtype)


def attention_pooling(feats, weight, bias=None, *, block_b=4,
                      feats_vmem_budget_bytes=None):
    """feats: (B, N, D); weight: nn.Linear(D, 1).weight as (1, D) / (D, 1) / (D,).

    `bias` is accepted for API parity but unused: a constant score shift is
    exactly cancelled by the softmax.  Returns (B, D) in feats.dtype.
    """
    del bias
    B, N, D = feats.shape
    out_dtype = feats.dtype
    itemsize = jnp.dtype(feats.dtype).itemsize

    # ---- hardware query (falls back to v7x-conservative numbers).
    try:
        vmem_cap = int(pltpu.get_tpu_info().vmem_capacity_bytes)
    except Exception:
        vmem_cap = 64 * 1024 * 1024

    # ---- batch tile: a divisor of B (never pad -> no HBM copy of feats).
    b_t = 1
    for cand in range(min(block_b, B), 0, -1):
        if B % cand == 0:
            b_t = cand
            break
    # Keep >= 2 batch ("parallel") grid steps when B >= 2 so both v7x
    # TensorCores get work (near-free extra grid steps on 1-TC v5e/v6e).
    if B >= 2 and B // b_t < 2:
        for cand in range(b_t - 1, 0, -1):
            if B % cand == 0 and B // cand >= 2:
                b_t = cand
                break
    # TODO(synk): for B == 1 on v7x, split the token (reduction) axis across the
    # two TensorCores with per-core partial (m, l, acc) and a small combine pass.

    # ---- token tile from a generation-aware VMEM budget (double-buffered feats
    # tile): ~38 MiB on 128 MiB v5e/v6e, ~19 MiB on 64 MiB v7x.
    if feats_vmem_budget_bytes is None:
        feats_vmem_budget_bytes = min(max(vmem_cap * 3 // 10, 8 * 1024 * 1024),
                                      40 * 1024 * 1024)
    max_nt = max(8, feats_vmem_budget_bytes // (2 * b_t * D * itemsize))
    if N <= max_nt:
        n_t = N                        # whole token axis in one block
    elif max_nt >= 128:
        n_t = (max_nt // 128) * 128    # large, lane/sublane-friendly token tile
    else:
        n_t = (max_nt // 8) * 8        # tight VMEM: still respect the (8,128) rule
    num_n = pl.cdiv(N, n_t)
    mask_tokens = (N % n_t) != 0       # partial last block -> mask inside the kernel
    # NOTE: if n_t ends up small, pipeline_mode=pl.Buffered(3) on the feats spec
    # is a further low-single-digit option; we prefer growing n_t instead.

    grid = (B // b_t, num_n)           # batch parallel, token (reduction) axis last

    # Weight row replicated to the batch tile (b_t * D elems, negligible HBM) so
    # the kernel's batched einsum needs no in-kernel broadcast.
    w_b = jnp.broadcast_to(
        jnp.asarray(weight, dtype=feats.dtype).reshape(1, 1, D), (b_t, 1, D))

    # ---- VMEM accounting: always set a limit (~1.5x need) and keep it well
    # below physical VMEM (room for Mosaic internal scratch + pipeline buffers).
    feats_block = b_t * n_t * D * itemsize
    small_blocks = 2 * (2 * b_t * D * itemsize)           # out + weight, 2-buffered
    scratch = 4 * (b_t * D + 2 * b_t * 128)               # f32 acc + (m, l), padded
    vmem_need = 2 * feats_block + small_blocks + scratch
    vmem_limit = int(min(max(1.5 * vmem_need, 24 * 1024 * 1024),
                         max(vmem_cap - 16 * 1024 * 1024, 32 * 1024 * 1024)))

    dot_precision = (lax.Precision.HIGHEST
                     if feats.dtype == jnp.float32 else None)

    kernel = functools.partial(_attn_pool_kernel, n_tokens=N, n_t=n_t,
                               mask_tokens=mask_tokens,
                               dot_precision=dot_precision)

    cost = pl.CostEstimate(
        flops=int(4 * B * N * D + 8 * B * N),
        transcendentals=int(B * N + 2 * B * num_n),
        bytes_accessed=int(itemsize * (B * N * D + B * D + b_t * D)),
    )

    out = pl.pallas_call(
        kernel,
        out_shape=jax.ShapeDtypeStruct((B, 1, D), out_dtype),
        grid=grid,
        in_specs=[
            pl.BlockSpec((b_t, n_t, D), lambda b, n: (b, n, 0)),    # feats tile
            pl.BlockSpec((b_t, 1, D), lambda b, n: (0, 0, 0)),      # weight (resident)
        ],
        out_specs=pl.BlockSpec((b_t, 1, D), lambda b, n: (b, 0, 0)),  # lane-dense out
        scratch_shapes=[
            pltpu.VMEM((b_t, 1, 1), jnp.float32),     # running max   m
            pltpu.VMEM((b_t, 1, 1), jnp.float32),     # running denom l
            pltpu.VMEM((b_t, 1, D), jnp.float32),     # running weighted sum
        ],
        compiler_params=pltpu.CompilerParams(
            dimension_semantics=("parallel", "arbitrary"),
            vmem_limit_bytes=vmem_limit,
        ),
        cost_estimate=cost,
    )(feats, w_b)

    return out.reshape(B, D)


def attention_pooling_ref(feats, weight, bias):
    w = jnp.asarray(weight).reshape(-1)
    scores = jnp.einsum("bnd,d->bn", feats, w) + bias.reshape(())[None, None]
    attn = jax.nn.softmax(scores, axis=1)
    return jnp.einsum("bn,bnd->bd", attn, feats)


if __name__ == "__main__":
    key = jax.random.PRNGKey(0)
    k_feats, k_w, k_b, k_feats2 = jax.random.split(key, 4)

    # --- small demo shapes consistent with the module ---
    B, N, D = 2, 8, 32
    feats = jax.random.normal(k_feats, (B, N, D), dtype=jnp.float32)
    bound = 1.0 / (D ** 0.5)
    weight = jax.random.uniform(k_w, (1, D), jnp.float32, -bound, bound)  # Linear.weight
    bias = jax.random.uniform(k_b, (1,), jnp.float32, -bound, bound)

    out = jax.block_until_ready(attention_pooling(feats, weight, bias))
    ref = attention_pooling_ref(feats, weight, bias)
    assert out.shape == (B, D), out.shape
    assert jnp.allclose(out, ref, atol=2e-3, rtol=2e-3)

    # --- exercise the multi-block online-softmax + partial-last-block masking
    #     path by forcing a tiny feats VMEM budget (token axis not divisible). ---
    B2, N2, D2 = 3, 200, 128
    feats2 = jax.random.normal(k_feats2, (B2, N2, D2), dtype=jnp.float32)
    weight2 = jax.random.uniform(k_w, (1, D2), jnp.float32, -bound, bound)
    out2 = jax.block_until_ready(
        attention_pooling(feats2, weight2, bias, feats_vmem_budget_bytes=64 * 1024))
    ref2 = attention_pooling_ref(feats2, weight2, bias)
    assert out2.shape == (B2, D2), out2.shape
    assert jnp.allclose(out2, ref2, atol=2e-3, rtol=2e-3)

    print("KERNEL_OK")
</pallas_src>

<mosaic_0001>
module attributes {stable_mosaic.version = 11 : i64} {
  func.func @_attn_pool_kernel(%arg0: i32, %arg1: i32, %arg2: memref<1x8x32xf32, #tpu.memory_space<vmem>>, %arg3: memref<1x1x32xf32, #tpu.memory_space<vmem>>, %arg4: memref<1x1x32xf32, #tpu.memory_space<vmem>>, %arg5: memref<1x1x1xf32, #tpu.memory_space<vmem>>, %arg6: memref<1x1x1xf32, #tpu.memory_space<vmem>>, %arg7: memref<1x1x32xf32, #tpu.memory_space<vmem>>) attributes {dimension_semantics = [#tpu.dimension_semantics<parallel>, #tpu.dimension_semantics<arbitrary>], iteration_bounds = array<i64: 2, 1>, scalar_prefetch = 0 : i64, scratch_operands = 3 : i64, tpu.core_type = #tpu.core_type<tc>, window_params = [{transform_indices = @transform_0, window_bounds = array<i64: 1, 8, 32>}, {pipeline_mode = #tpu.pipeline_mode<synchronous>, transform_indices = @transform_1, window_bounds = array<i64: 1, 1, 32>}, {transform_indices = @transform_2, window_bounds = array<i64: 1, 1, 32>}]} {
    %c0_i32 = arith.constant 0 : i32
    %0 = arith.cmpi eq, %arg1, %c0_i32 : i32
    %1 = arith.extui %0 : i1 to i32
    %c0_i32_0 = arith.constant 0 : i32
    %2 = arith.cmpi ne, %1, %c0_i32_0 : i32
    scf.if %2 {
      %cst_29 = arith.constant 0xFF800000 : f32
      %31 = vector.broadcast %cst_29 : f32 to vector<1x1x1xf32>
      %c0_30 = arith.constant 0 : index
      %c0_31 = arith.constant 0 : index
      %c0_32 = arith.constant 0 : index
      %32 = vector.load %arg5[%c0_30, %c0_31, %c0_32] : memref<1x1x1xf32, #tpu.memory_space<vmem>>, vector<1x1x1xf32>
      tpu.vector_store %arg5[%c0_30, %c0_31, %c0_32], %31 {strides = array<i32>} : memref<1x1x1xf32, #tpu.memory_space<vmem>>, vector<1x1x1xf32>,
      %cst_33 = arith.constant 0.000000e+00 : f32
      %33 = vector.broadcast %cst_33 : f32 to vector<1x1x1xf32>
      %c0_34 = arith.constant 0 : index
      %c0_35 = arith.constant 0 : index
      %c0_36 = arith.constant 0 : index
      %34 = vector.load %arg6[%c0_34, %c0_35, %c0_36] : memref<1x1x1xf32, #tpu.memory_space<vmem>>, vector<1x1x1xf32>
      tpu.vector_store %arg6[%c0_34, %c0_35, %c0_36], %33 {strides = array<i32>} : memref<1x1x1xf32, #tpu.memory_space<vmem>>, vector<1x1x1xf32>,
      %cst_37 = arith.constant 0.000000e+00 : f32
      %35 = vector.broadcast %cst_37 : f32 to vector<1x1x32xf32>
      %c0_38 = arith.constant 0 : index
      %c0_39 = arith.constant 0 : index
      %c0_40 = arith.constant 0 : index
      %36 = vector.load %arg7[%c0_38, %c0_39, %c0_40] : memref<1x1x32xf32, #tpu.memory_space<vmem>>, vector<1x1x32xf32>
      tpu.vector_store %arg7[%c0_38, %c0_39, %c0_40], %35 {strides = array<i32>} : memref<1x1x32xf32, #tpu.memory_space<vmem>>, vector<1x1x32xf32>,
    } else {
    }
    %c0 = arith.constant 0 : index
    %c0_1 = arith.constant 0 : index
    %c0_2 = arith.constant 0 : index
    %3 = vector.load %arg2[%c0, %c0_1, %c0_2] : memref<1x8x32xf32, #tpu.memory_space<vmem>>, vector<1x8x32xf32>
    %c0_3 = arith.constant 0 : index
    %c0_4 = arith.constant 0 : index
    %c0_5 = arith.constant 0 : index
    %4 = vector.load %arg3[%c0_3, %c0_4, %c0_5] : memref<1x1x32xf32, #tpu.memory_space<vmem>>, vector<1x1x32xf32>
    "tpu.trace_start"() <{level = 10 : i32, message = "bod,bnd->bon"}> : () -> ()
    %cst = arith.constant dense<0.000000e+00> : vector<1x1x8xf32>
    %5 = tpu.matmul %4, %3, %cst {dimension_numbers = #tpu.dot_dimension_numbers<[2], [2], [1], [1], [0, 0, 0, 1, 1, 1], [0], [0]>, precision = #tpu.contract_precision<fp32>} : vector<1x1x32xf32>, vector<1x8x32xf32>, vector<1x1x8xf32> -> vector<1x1x8xf32>
    "tpu.trace_stop"() : () -> ()
    %c0_6 = arith.constant 0 : index
    %c0_7 = arith.constant 0 : index
    %c0_8 = arith.constant 0 : index
    %6 = vector.load %arg5[%c0_6, %c0_7, %c0_8] : memref<1x1x1xf32, #tpu.memory_space<vmem>>, vector<1x1x1xf32>
    %cst_9 = arith.constant dense<0xFF800000> : vector<1x1xf32>
    %7 = vector.multi_reduction <maximumf>, %5, %cst_9 [2] : vector<1x1x8xf32> to vector<1x1xf32>
    %8 = vector.shape_cast %7 : vector<1x1xf32> to vector<1x1x1xf32>
    %9 = arith.maximumf %6, %8 : vector<1x1x1xf32>
    %10 = arith.subf %6, %9 : vector<1x1x1xf32>
    %11 = math.exp %10 : vector<1x1x1xf32>
    %12 = vector.broadcast %9 : vector<1x1x1xf32> to vector<1x1x8xf32>
    %13 = arith.subf %5, %12 : vector<1x1x8xf32>
    %14 = math.exp %13 : vector<1x1x8xf32>
    %c0_10 = arith.constant 0 : index
    %c0_11 = arith.constant 0 : index
    %c0_12 = arith.constant 0 : index
    %15 = vector.load %arg6[%c0_10, %c0_11, %c0_12] : memref<1x1x1xf32, #tpu.memory_space<vmem>>, vector<1x1x1xf32>
    %16 = arith.mulf %11, %15 : vector<1x1x1xf32>
    %cst_13 = arith.constant dense<0.000000e+00> : vector<1x1xf32>
    %17 = vector.multi_reduction <add>, %14, %cst_13 [2] : vector<1x1x8xf32> to vector<1x1xf32>
    %18 = vector.shape_cast %17 : vector<1x1xf32> to vector<1x1x1xf32>
    %19 = arith.addf %16, %18 : vector<1x1x1xf32>
    %c0_14 = arith.constant 0 : index
    %c0_15 = arith.constant 0 : index
    %c0_16 = arith.constant 0 : index
    %20 = vector.load %arg6[%c0_14, %c0_15, %c0_16] : memref<1x1x1xf32, #tpu.memory_space<vmem>>, vector<1x1x1xf32>
    tpu.vector_store %arg6[%c0_14, %c0_15, %c0_16], %19 {strides = array<i32>} : memref<1x1x1xf32, #tpu.memory_space<vmem>>, vector<1x1x1xf32>,
    %c0_17 = arith.constant 0 : index
    %c0_18 = arith.constant 0 : index
    %c0_19 = arith.constant 0 : index
    %21 = vector.load %arg7[%c0_17, %c0_18, %c0_19] : memref<1x1x32xf32, #tpu.memory_space<vmem>>, vector<1x1x32xf32>
    %22 = vector.broadcast %11 : vector<1x1x1xf32> to vector<1x1x32xf32>
    %23 = arith.mulf %22, %21 : vector<1x1x32xf32>
    "tpu.trace_start"() <{level = 10 : i32, message = "bon,bnd->bod"}> : () -> ()
    %cst_20 = arith.constant dense<0.000000e+00> : vector<1x1x32xf32>
    %24 = tpu.matmul %14, %3, %cst_20 {dimension_numbers = #tpu.dot_dimension_numbers<[2], [1], [1], [2], [0, 0, 0, 1, 1, 2], [0], [0]>, precision = #tpu.contract_precision<fp32>} : vector<1x1x8xf32>, vector<1x8x32xf32>, vector<1x1x32xf32> -> vector<1x1x32xf32>
    "tpu.trace_stop"() : () -> ()
    %25 = arith.addf %23, %24 : vector<1x1x32xf32>
    %c0_21 = arith.constant 0 : index
    %c0_22 = arith.constant 0 : index
    %c0_23 = arith.constant 0 : index
    %26 = vector.load %arg7[%c0_21, %c0_22, %c0_23] : memref<1x1x32xf32, #tpu.memory_space<vmem>>, vector<1x1x32xf32>
    tpu.vector_store %arg7[%c0_21, %c0_22, %c0_23], %25 {strides = array<i32>} : memref<1x1x32xf32, #tpu.memory_space<vmem>>, vector<1x1x32xf32>,
    %c0_24 = arith.constant 0 : index
    %c0_25 = arith.constant 0 : index
    %c0_26 = arith.constant 0 : index
    %27 = vector.load %arg5[%c0_24, %c0_25, %c0_26] : memref<1x1x1xf32, #tpu.memory_space<vmem>>, vector<1x1x1xf32>
    tpu.vector_store %arg5[%c0_24, %c0_25, %c0_26], %9 {strides = array<i32>} : memref<1x1x1xf32, #tpu.memory_space<vmem>>, vector<1x1x1xf32>,
    %c0_i32_27 = arith.constant 0 : i32
    %28 = arith.cmpi eq, %arg1, %c0_i32_27 : i32
    %29 = arith.extui %28 : i1 to i32
    %c0_i32_28 = arith.constant 0 : i32
    %30 = arith.cmpi ne, %29, %c0_i32_28 : i32
    scf.if %30 {
      %c0_29 = arith.constant 0 : index
      %c0_30 = arith.constant 0 : index
      %c0_31 = arith.constant 0 : index
      %31 = vector.load %arg7[%c0_29, %c0_30, %c0_31] : memref<1x1x32xf32, #tpu.memory_space<vmem>>, vector<1x1x32xf32>
      %c0_32 = arith.constant 0 : index
      %c0_33 = arith.constant 0 : index
      %c0_34 = arith.constant 0 : index
      %32 = vector.load %arg6[%c0_32, %c0_33, %c0_34] : memref<1x1x1xf32, #tpu.memory_space<vmem>>, vector<1x1x1xf32>
      %33 = vector.broadcast %32 : vector<1x1x1xf32> to vector<1x1x32xf32>
      %34 = arith.divf %31, %33 : vector<1x1x32xf32>
      %c0_35 = arith.constant 0 : index
      %c0_36 = arith.constant 0 : index
      %c0_37 = arith.constant 0 : index
      %35 = vector.load %arg4[%c0_35, %c0_36, %c0_37] : memref<1x1x32xf32, #tpu.memory_space<vmem>>, vector<1x1x32xf32>
      tpu.vector_store %arg4[%c0_35, %c0_36, %c0_37], %34 {strides = array<i32>} : memref<1x1x32xf32, #tpu.memory_space<vmem>>, vector<1x1x32xf32>,
    } else {
    }
    return
  }
  func.func @transform_0(%arg0: i32, %arg1: i32) -> (i32, i32, i32) {
    %c0_i32 = arith.constant 0 : i32
    %c0_i32_0 = arith.constant 0 : i32
    return %arg0, %arg1, %c0_i32 : i32, i32, i32
  }
  func.func @transform_1(%arg0: i32, %arg1: i32) -> (i32, i32, i32) {
    %c0_i32 = arith.constant 0 : i32
    %c0_i32_0 = arith.constant 0 : i32
    %c0_i32_1 = arith.constant 0 : i32
    %c0_i32_2 = arith.constant 0 : i32
    return %c0_i32, %c0_i32_0, %c0_i32_1 : i32, i32, i32
  }
  func.func @transform_2(%arg0: i32, %arg1: i32) -> (i32, i32, i32) {
    %c0_i32 = arith.constant 0 : i32
    %c0_i32_0 = arith.constant 0 : i32
    %c0_i32_1 = arith.constant 0 : i32
    return %arg0, %c0_i32, %c0_i32_0 : i32, i32, i32
  }
}

</mosaic_0001>

<bundles_post_ra>
// kernel: tpu_custom_call.1
= control target key start
LH: loop header
LB: loop body
LE: loop exit
PB: predicated region body
PF: predicated region fallthrough
CT: control target
= control target key end

     0   :  { %7 = vsyncpa [#allocation6], 0  ;;  %s1737_s0 = inlined_call_operand.hbm [shape: f32[2,8,32], index: 0, kind: input, shape index: {}]   ;;  %s1738_s1 = inlined_call_operand.vmem [shape: f32[1,1,32], index: 1, kind: input, shape index: {}]   ;;  %s1739_s2 = inlined_call_operand.hbm [shape: f32[2,1,32], index: 2, kind: output, shape index: {}]  }
   0x1   :  { %9 = vsyncpa [#allocation6 + $0x1], 0 }
   0x2   :  { %10 = vsyncpa [#allocation7], 0 }
   0x3   :  { %12 = vsyncpa [#allocation7 + $0x1], 0  ;;  %s1536_s9 = smov 0   ;;  %s1538_s10 = smov 0  }
   0x4   :  { %s1540_s11 = smov 0   ;;  %s1542_s12 = smov 0  }
   0x5   :  { %s1544_s13 = smov 0   ;;  %s1546_s14 = smov 0  }
   0x6 LB: > { %s1236_s15 = sadd.s32 4294967295, %s1513_s14   ;;  %s1237_s16 = sadd.s32 4294967294, %s1513_s14   ;;  %s1513_s14 = sphi %s1546_s14, %s18_s14   ;;  %s1509_s13 = sphi %s1544_s13, %s1751_s13   ;;  %s1505_s12 = sphi %s1542_s12, %s1750_s12   ;;  %s1501_s11 = sphi %s1540_s11, %s1749_s11   ;;  %s1497_s10 = sphi %s1538_s10, %s1748_s10   ;;  %s1493_s9 = sphi %s1536_s9, %s1747_s9  }
   0x7   : > { %s30_s17 = sadd.s32 1, %s1509_s13  ;;  %s39_s18 = sadd.s32 1, %s1501_s11 }
   0x8   : > { %p32_p0 = scmp.ge.s32.totalorder %s30_s17, 2  ;;  %p46_p1 = scmp.ne.s32.totalorder %s1501_s11, %s1497_s10 }
   0x9   : > { %p47_p2 = scmp.eq.s32.totalorder %s1513_s14, 0  ;;  %p52_p3 = scmp.ne.s32.totalorder %s1497_s10, %s1493_s9 }
   0xa   : > { %s1753_s17 = smov (%p32_p0, %s30_s17), 0  ;;  %p53_p5 = scmp.eq.s32.totalorder %s1236_s15, 0 }
   0xb   : > { %p1577_p4 = por %p47_p2, %p46_p1  ;;  %s34_s20 = ssub.s32 %s1509_s13, %s1753_s17 }
   0xc   : > { %p97_p6 = scmp.eq.s32.totalorder %s1236_s15, 1  ;;  %p37_p7 = scmp.eq.s32.totalorder %s34_s20, 0 }
   0xd   : > { %p1583_p8 = por %p53_p5, %p52_p3  ;;  %p103_p10 = scmp.eq.s32.totalorder %s1237_s16, 1 }
   0xe   : > { %p1587_p9 = por %p97_p6, %p46_p1  ;;  %p1343_p13 = scmp.lt.s32.totalorder %s1513_s14, 2 }
   0xf   : > { %s1592_s23 = scalar_select %p37_p7, %s1501_s11, %s39_s18  }
  0x10   : > { %p1594_p11 = por %p103_p10, %p52_p3  ;;  %s126_s25 = sand.u32 1, %s1501_s11  }
  0x11   : > { %s1240_s26 = sshll.u32 %s126_s25, 3  ;;  %s1241_s27 = sshll.u32 %s1509_s13, 7 }
  0x12   : > { %s1743_s24 = scalar_select %p1594_p11, 1, 0 }
  0x13   : > { %s136_s30 = scalar_lea.hbm %s1737_s0, %s1241_s27  ;;  %s130_s3 = scalar_lea.vmem [#allocation5], %s1240_s26 }
  0x14   : > { %s138_s4 = sshll.u32 %s130_s3, 4  ;;  %p1607_p0 = pnand %p1343_p13, %p1577_p4  ;;  %s139_s4 = int_to_ptr.vmem [resolvable:$true] %s138_s4 }
  0x15   : > { %p1242_p1 = scmp.ge.s32.totalorder %s1513_s14, 1  ;;  %p143_p2 = scmp.lt.s32.totalorder %s1513_s14, 3 }
  0x16   : > { %s127_s6 = scalar_lea.sflag [#allocation6], %s126_s25  ;;  %p1407_p3 = pneg %p1607_p0 }
  0x17   : > { %s1418_s7 = scalar_lea.vmem %s139_s4, 128  ;;  %s1515_s8 = smov [#allocation5]  }
  0x18   : > { %p1419_p5 = scmp.ne.s32.totalorder %s139_s4, %s1418_s7  ;;  %s1423_s15 = sshll.u32 %s1515_s8, 4  ;;  %s1424_s15 = int_to_ptr.vmem [resolvable:$false] %s1423_s15 }
  0x19   : > { %s1425_s16 = scalar_lea.vmem %s1424_s15, 256  ;;  %p1426_p10 = scmp.lt.s32.totalorder %s139_s4, %s1424_s15 }
  0x1a   : > { %p1421_p6 = pnand %p1419_p5, %p1407_p3  ;;  %p1427_p12 = scmp.lt.s32.totalorder %s1425_s16, %s1418_s7 }
  0x1c   : > { %p1422_p7 = pneg %p1421_p6  ;;  %p1428_p4 = por %p1427_p12, %p1426_p10 }
  0x1e   : > { %p1429_p13 = pnand %p1428_p4, %p1422_p7 }
  0x20   : > { %1432 = shalt.err (!%p1429_p13)
}
  0x21   : > { %1338 = dma.hbm_to_vmem [thread:$0]  (!%p1607_p0), %s136_s30, 128, %s139_s4, %s127_s6  }
  0x22   : > { %p144_p11 = pnand %p1242_p1, %p143_p2 }
  0x23   : > { %s1622_s18 = sand.u32 (!%p144_p11), 1, %s1497_s10  }
  0x24   : > { %147 = sbr.rel (%p144_p11) target bundleno = 851 (0x353), region = 28  ;;  %s1243_s19 = sshll.u32 (!%p144_p11), %s1622_s18, 3 }
  0x25   : > { %s150_s20 = scalar_lea.sflag (!%p144_p11), [#allocation6], %s1622_s18  ;;  %s153_s25 = scalar_lea.vmem (!%p144_p11), [#allocation5], %s1243_s19 }
  0x29   : > { %1484 = dma.done.wait (%p1583_p8), %s150_s20, 128  }
  0x2a   : > { %1486 = vsyncadd (%p1583_p8), %s150_s20, 4294967168  ;;  %v1516_v0 = vmov 0.0   ;;  %vm1517_vm0 = vmmov 0   ;;  %vm184_vm1 = vcmask 261120   ;;  %v1636_v1 = vld [vmem:[%s153_s25] sm:$0xff]  ;;  %vm177_vm2 = vcmask 0  }
  0x2b   : > { %1271 = vmatprep.subr.mxu0 %v1516_v0  ;;  %1273 = vmatprep.mubr.msk.f32.mxu0 %vm1517_vm0, %v1516_v0  ;;  %v183_v2 = vld [vmem:[%s1738_s1] sm:$0x1]  ;;  %v189_v3 = vsel %vm184_vm1, %v1636_v1, 0  ;;  %v1654_v15 = vand.u32 4294901760, %v1636_v1  ;;  %v1518_v16 = vmov -inf   ;;  %vm638_vm3 = vcmask 57344  }
  0x2c   : > { %1276 = vmatprep.subr.mxu1 %v1516_v0  ;;  %1278 = vmatprep.mubr.msk.f32.mxu1 %vm1517_vm0, %v1516_v0  ;;  %v186_v4 = vsel %vm184_vm1, %v183_v2, 0  ;;  %v222_v5 = vand.u32 4294901760, %v189_v3  ;;  %178 = vst.msk [vmem:[#allocation2] sm:$0x1] %vm177_vm2, %v1518_v16  ;;  %179 = vst.msk [vmem:[#allocation3] sm:$0x1] %vm177_vm2, %v1516_v0  ;;  %v651_v44 = vlaneseq }
  0x2d   : > { %v257_v6 = vand.u32 4294901760, %v186_v4  ;;  %v1519_v35 = vmov 0   ;;  %v789_v40 = vsub.f32 %v1636_v1, %v1654_v15  ;;  %vm677_vm4 = vcmask 64512   ;;  %s1244_s21 = sshll.u32 %s1505_s12, 4  ;;  %s172_s28 = scalar_lea.vmem [#allocation8], %s1622_s18 }
  0x2e   : > { %1272 = vmatpush3.xpose.msra.mxu0 %v222_v5  ;;  %v299_v8 = vsub.f32 %v189_v3, %v222_v5  ;;  %1397 = vset.pattern.permute.xlu0 %v1519_v35  ;;  %v652_v45 = vshrl.u32 %v651_v44, 7  ;;  %vm180_vm5 = vcmask 253952   ;;  %s1161_s29 = sshll.u32 %s172_s28, 4  ;;  %s1159_s4 = scalar_lea.hbm %s1739_s2, %s1244_s21  ;;  %s1162_s29 = int_to_ptr.vmem [resolvable:$true] %s1161_s29 }
  0x2f   : > { %v258_v7 = vsub.f32 %v186_v4, %v257_v6  ;;  %1281 = vmatprep.subr.mxu0 %v1516_v0  ;;  %1398 = vset.pattern.permute.xlu1 %v1519_v35  ;;  %v790_v41 = vand.u32 4294901760, %v789_v40  ;;  %181 = vst.msk [vmem:[#allocation4] sm:$0x1] %vm180_vm5, %v1516_v0  ;;  %s1149_s5 = scalar_lea.sflag [#allocation7], %s1622_s18  ;;  %s1433_s6 = scalar_lea.vmem %s1162_s29, 16 }
  0x30   : > { %v300_v10 = vand.u32 4294901760, %v299_v8  ;;  %v1673_v46 = vsub.s32 0, %v652_v45  ;;  %p1434_p8 = scmp.ne.s32.totalorder %s1162_s29, %s1433_s6  ;;  %s1520_s7 = smov [#allocation8]  }
  0x31   : > { %v259_v9 = vand.u32 4294901760, %v258_v7  ;;  %v791_v42 = vsub.f32 %v789_v40, %v790_v41  ;;  %s1437_s12 = sshll.u32 %s1520_s7, 4  ;;  %s1438_s12 = int_to_ptr.vmem [resolvable:$false] %s1437_s12 }
  0x32   : > { %v301_v12 = vsub.f32 %v299_v8, %v300_v10  ;;  %p1435_p11 = pnand %p1434_p8, %p1587_p9  ;;  %s1439_s8 = scalar_lea.vmem %s1438_s12, 32 }
  0x33   : > { %v260_v11 = vsub.f32 %v258_v7, %v259_v9  ;;  %v637_v36 = vld [vmem:[#allocation2] sm:$0x1]  ;;  %v792_v43 = vand.u32 4294901760, %v791_v42  ;;  %v658_v61 = vld [vmem:[#allocation3] sm:$0x1]  ;;  %p1440_p0 = scmp.lt.s32.totalorder %s1162_s29, %s1438_s12  ;;  %p1441_p1 = scmp.lt.s32.totalorder %s1439_s8, %s1433_s6 }
  0x34   : > { %v302_v14 = vand.u32 4294901760, %v301_v12  ;;  %p1436_p12 = pneg %p1435_p11 }
  0x35   : > { %v261_v13 = vand.u32 4294901760, %v260_v11  ;;  %p1442_p2 = por %p1441_p1, %p1440_p0 }
  0x36   : > { %1277 = vmatpush3.xpose.msra.mxu1 %v302_v14 }
  0x37   : > { %1274 = vmatmul.mubr.f32.vlgmr.msra.gmra.mxu0 %v261_v13  ;;  %1286 = vmatprep.subr.mxu1 %v1516_v0  ;;  %p1443_p3 = pnand %p1442_p2, %p1436_p12 }
  0x38   : > { %1282 = vmatpush3.xpose.msra.mxu0 %v299_v8  ;;  %1283 = vmatprep.mubr.msk.f32.mxu0 %vm1517_vm0, %v1516_v0 }
  0x39   : > { %1291 = vmatprep.subr.mxu0 %v1516_v0  ;;  %1279 = vmatmul.mubr.f32.vlgmr.msra.gmra.mxu1 %v257_v6 }
  0x3a   : > { %1287 = vmatpush3.xpose.msra.mxu1 %v222_v5  ;;  %1288 = vmatprep.mubr.msk.f32.mxu1 %vm1517_vm0, %v1516_v0 }
  0x3b   : > { %1284 = vmatmul.mubr.f32.vlgmr.msra.gmra.mxu0 %v258_v7  ;;  %1296 = vmatprep.subr.mxu1 %v1516_v0 }
  0x3c   : > { %1292 = vmatpush3.xpose.msra.mxu0 %v300_v10  ;;  %1293 = vmatprep.mubr.msk.f32.mxu0 %vm1517_vm0, %v1516_v0 }
  0x3d   : > { %1289 = vmatmul.mubr.f32.vlgmr.msra.gmra.mxu1 %v259_v9  ;;  %1301 = vmatprep.subr.mxu0 %v1516_v0 }
  0x3e   : > { %1297 = vmatpush3.xpose.msra.mxu1 %v222_v5  ;;  %1298 = vmatprep.mubr.msk.f32.mxu1 %vm1517_vm0, %v1516_v0 }
  0x3f   : > { %1294 = vmatmul.mubr.f32.vlgmr.msra.gmra.mxu0 %v257_v6  ;;  %1306 = vmatprep.subr.mxu1 %v1516_v0 }
  0x40   : > { %1302 = vmatpush3.msra.mxu0 %v1654_v15  ;;  %1303 = vmatprep.mubr.msk.f32.mxu0 %vm1517_vm0, %v1516_v0 }
  0x41   : > { %1299 = vmatmul.mubr.f32.vlgmr.msra.gmra.mxu1 %v257_v6  ;;  %1311 = vmatprep.subr.mxu0 %v1516_v0 }
  0x42   : > { %1308 = vmatprep.mubr.msk.f32.mxu1 %vm1517_vm0, %v1516_v0  ;;  %1307 = vmatpush3.msra.mxu1 %v792_v43 }
  0x43   : > { %1316 = vmatprep.subr.mxu1 %v1516_v0 }
  0xf7   : > { %v263_v17 = vpop.f32.mrf.mxu0 }
  0xf9   : > { %v1275_v18 = vpop.f32.mrf.mxu0  ;;  %v339_v19 = vpop.f32.mrf.mxu1 }
  0xfa   : > { %v340_v20 = vadd.f32 %v339_v19, %v263_v17 }
  0xfb   : > { %v413_v21 = vpop.f32.mrf.mxu0  ;;  %v1280_v22 = vpop.f32.mrf.mxu1 }
  0xfc   : > { %v414_v23 = vadd.f32 %v413_v21, %v340_v20  ;;  %v666_v21 = vld [vmem:[#allocation4] sm:$0x1] }
  0xfd   : > { %v1285_v24 = vpop.f32.mrf.mxu0  ;;  %v487_v25 = vpop.f32.mrf.mxu1 }
  0xfe   : > { %v488_v26 = vadd.f32 %v487_v25, %v414_v23 }
  0xff   : > { %v561_v27 = vpop.f32.mrf.mxu0  ;;  %v1290_v28 = vpop.f32.mrf.mxu1 }
 0x100   : > { %v562_v29 = vadd.f32 %v561_v27, %v488_v26 }
 0x101   : > { %v1295_v30 = vpop.f32.mrf.mxu0  ;;  %v633_v31 = vpop.f32.mrf.mxu1 }
 0x102   : > { %v634_v32 = vadd.f32 %v633_v31, %v562_v29 }
 0x103   : > { %v1300_v33 = vpop.f32.mrf.mxu1 }
 0x104   : > { %v639_v34 = vsel %vm638_vm3, %v634_v32, -inf }
 0x105   : > { %640 = vmax.xlane.f32.xlu0 %v639_v34 }
 0x18e   : > { %v641_v37 = vpop.xlane.xlu0 %640 }
 0x18f   : > { %v642_v38 = vmax.f32 %v637_v36, %v641_v37 }
 0x191   : > { %v643_v39 = vsub.f32 %v637_v36, %v642_v38  ;;  %1130 = vst.msk [vmem:[#allocation2] sm:$0x1] %vm177_vm2, %v642_v38  ;;  %648 = vperm.xlu0 %1397, %v642_v38  }
 0x193   : > { %v644_v59 = vmul.f32 1.442695, %v643_v39 }
 0x20c   : > { %v649_v47 = vpop.permute.xlu0 %648 }
 0x20d   : > { %v654_v48 = vrot.slane %v649_v47, %v1673_v46 }
 0x20f   : > { %v655_v49 = vsub.f32 %v634_v32, %v654_v48 }
 0x211   : > { %v656_v50 = vmul.f32 1.442695, %v655_v49 }
 0x213   : > { %1399 = vpow2.f32 %v656_v50 }
 0x214   : > { %1401 = vpow2.f32 %v644_v59 }
 0x220   : > { %v1400_v51 = vpop.eup %1399 }
 0x221   : > { %v660_v52 = vsel %vm638_vm3, %v1400_v51, 0.0  ;;  %v679_v53 = vsel %vm677_vm4, %v1400_v51, 0  ;;  %v1402_v60 = vpop.eup %1401 }
 0x222   : > { %661 = vadd.xlane.f32.xlu1 %v660_v52  ;;  %v747_v54 = vand.u32 4294901760, %v679_v53  ;;  %v659_v62 = vmul.f32 %v1402_v60, %v658_v61 }
 0x224   : > { %v748_v55 = vsub.f32 %v679_v53, %v747_v54  ;;  %1309 = vmatmul.mubr.f32.vlgmr.msra.gmra.mxu1 %v747_v54 }
 0x225   : > { %1317 = vmatpush3.msra.mxu1 %v1654_v15  ;;  %1318 = vmatprep.mubr.msk.f32.mxu1 %vm1517_vm0, %v1516_v0 }
 0x226   : > { %v749_v56 = vand.u32 4294901760, %v748_v55  ;;  %1326 = vmatprep.subr.mxu1 %v1516_v0 }
 0x228   : > { %1319 = vmatmul.mubr.f32.vlgmr.msra.gmra.mxu1 %v749_v56  ;;  %v750_v57 = vsub.f32 %v748_v55, %v749_v56 }
 0x229   : > { %1327 = vmatpush3.msra.mxu1 %v1654_v15  ;;  %1328 = vmatprep.mubr.msk.f32.mxu1 %vm1517_vm0, %v1516_v0 }
 0x22a   : > { %v751_v58 = vand.u32 4294901760, %v750_v57 }
 0x22c   : > { %1304 = vmatmul.mubr.f32.vlgmr.msra.gmra.mxu0 %v751_v58  ;;  %1329 = vmatmul.mubr.f32.vlgmr.msra.gmra.mxu1 %v747_v54 }
 0x22d   : > { %1312 = vmatpush3.msra.mxu0 %v789_v40  ;;  %1313 = vmatprep.mubr.msk.f32.mxu0 %vm1517_vm0, %v1516_v0 }
 0x22e   : > { %1321 = vmatprep.subr.mxu0 %v1516_v0 }
 0x230   : > { %1314 = vmatmul.mubr.f32.vlgmr.msra.gmra.mxu0 %v748_v55 }
 0x231   : > { %1322 = vmatpush3.msra.mxu0 %v790_v41  ;;  %1323 = vmatprep.mubr.msk.f32.mxu0 %vm1517_vm0, %v1516_v0 }
 0x234   : > { %1324 = vmatmul.mubr.f32.vlgmr.msra.gmra.mxu0 %v747_v54 }
 0x2ab   : > { %v662_v63 = vpop.xlane.xlu1 %661 }
 0x2ac   : > { %v663_v1 = vadd.f32 %v662_v63, %v659_v62 }
 0x2ae   : > { %665 = vst.msk [vmem:[#allocation3] sm:$0x1] %vm177_vm2, %v663_v1 }
 0x2b5   : > { %v1135_v2 = vld [vmem:[#allocation3] sm:$0x1] }
 0x2b6   : > { %1138 = vperm.xlu1 %1398, %v1135_v2  }
 0x2ba   : > { %669 = vperm.xlu1 %1398, %v1402_v60  }
 0x2e4   : > { %v829_v3 = vpop.f32.mrf.mxu1 }
 0x2e6   : > { %v1310_v4 = vpop.f32.mrf.mxu1 }
 0x2e8   : > { %v977_v5 = vpop.f32.mrf.mxu1 }
 0x2ea   : > { %v1320_v6 = vpop.f32.mrf.mxu1 }
 0x2ec   : > { %v753_v7 = vpop.f32.mrf.mxu0  ;;  %v1123_v8 = vpop.f32.mrf.mxu1 }
 0x2ed   : > { %v830_v9 = vadd.f32 %v829_v3, %v753_v7 }
 0x2ee   : > { %v1305_v10 = vpop.f32.mrf.mxu0  ;;  %v1330_v11 = vpop.f32.mrf.mxu1 }
 0x2f0   : > { %v903_v12 = vpop.f32.mrf.mxu0 }
 0x2f1   : > { %v904_v13 = vadd.f32 %v903_v12, %v830_v9 }
 0x2f2   : > { %v1315_v14 = vpop.f32.mrf.mxu0 }
 0x2f3   : > { %v978_v15 = vadd.f32 %v977_v5, %v904_v13 }
 0x2f4   : > { %v1051_v16 = vpop.f32.mrf.mxu0 }
 0x2f5   : > { %v1052_v0 = vadd.f32 %v1051_v16, %v978_v15 }
 0x2f6   : > { %v1325_v17 = vpop.f32.mrf.mxu0 }
 0x2f7   : > { %v1124_v18 = vadd.f32 %v1123_v8, %v1052_v0 }
 0x331   : > { %v1139_v19 = vpop.permute.xlu1 %1138 }
 0x332   : > { %v1144_v20 = vrot.slane %v1139_v19, %v1673_v46 }
 0x334   : > { %1403 = vrcp.f32 %v1144_v20 }
 0x335   : > { %v670_v22 = vpop.permute.xlu1 %669 }
 0x336   : > { %v675_v23 = vrot.slane %v670_v22, %v1673_v46 }
 0x338   : > { %v676_v24 = vmul.f32 %v675_v23, %v666_v21 }
 0x33a   : > { %v1127_v25 = vadd.f32 %v1124_v18, %v676_v24 }
 0x33c   : > { %1129 = vst.msk [vmem:[#allocation4] sm:$0x1] %vm180_vm5, %v1127_v25 }
 0x341   : > { %v1404_v26 = vpop.eup %1403 }
 0x343   : > { %v1134_v27 = vld [vmem:[#allocation4] sm:$0x1] }
 0x344   : > { %v1146_v28 = vmul.f32 %v1404_v26, %v1134_v27 }
 0x346   : > { %1147 = vst.msk [vmem:[%s172_s28] sm:$0x1] %vm180_vm5, %v1146_v28 }
 0x347   : > { %1446 = shalt.err (!%p1443_p3)
}
 0x348   : > { %s1447_s15 = scalar_lea.hbm %s1159_s4, 16  ;;  %s1451_s19 = scalar_lea.hbm %s1739_s2, 32 }
 0x349   : > { %p1448_p5 = scmp.ne.s32.totalorder %s1159_s4, %s1447_s15  ;;  %p1452_p10 = scmp.lt.s32.totalorder %s1159_s4, %s1739_s2 }
 0x34a   : > { %p1453_p4 = scmp.lt.s32.totalorder %s1451_s19, %s1447_s15 }
 0x34b   : > { %p1449_p6 = pnand %p1448_p5, %p1587_p9 }
 0x34c   : > { %p1454_p13 = por %p1453_p4, %p1452_p10 }
 0x34d   : > { %p1450_p7 = pneg %p1449_p6 }
 0x34f   : > { %p1455_p8 = pnand %p1454_p13, %p1450_p7 }
 0x351   : > { %1458 = shalt.err (!%p1455_p8)
}
 0x352   : > { %1333 = dma.vmem_to_hbm [thread:$0]  (%p1587_p9), %s1162_s29, 16, %s1159_s4, %s1149_s5  }
 0x353 PF: > { %s1173_s26 = sand.u32 1, %s1493_s9   ;;  %p1745_p11 = scmp.ne.s32.totalorder %s1743_s24, 0 }
 0x354   : > { %p1746_p12 = scmp.ge.s32.totalorder %s1513_s14, 2  ;;  %s1174_s27 = scalar_lea.sflag [#allocation7], %s1173_s26 }
 0x356   : > { %p1340_p0 = pnand %p1746_p12, %p1745_p11 }
 0x358   : > { %p1341_p1 = pneg %p1340_p0 }
 0x35a   : > { %1488 = dma.done.wait (%p1341_p1), %s1174_s27, 16  }
 0x35b   : > { %1490 = vsyncadd (%p1341_p1), %s1174_s27, 4294967280  ;;  %s18_s14 = sadd.s32 1, %s1513_s14   ;;  %s1747_s9 = smov %s1497_s10 }
 0x35c   : > { %p15_p2 = scmp.ge.s32.totalorder %s18_s14, 4   ;;  %s1748_s10 = smov %s1501_s11 }
 0x35d   : > { %s1749_s11 = smov %s1592_s23  ;;  %s1750_s12 = smov %s1509_s13 }
 0x35e   : > { %s1751_s13 = smov %s1753_s17  ;;  %17 = sbr.rel (!%p15_p2) target bundleno = 6 (0x6), region = 81 }
 0x363   :  { %1178 = vsyncpa [#allocation6], 1 }
 0x364   :  { %1180 = vsyncpa [#allocation6 + $0x1], 1 }
 0x365   :  { %1181 = vsyncpa [#allocation7], 1 }
 0x366   :  { %1183 = vsyncpa [#allocation7 + $0x1], 1 }

</bundles_post_ra>
